<compile_context>
chip_gen: v6e
topology: v6e:2x2x1
jax: 0.10.0
libtpu: 0.0.40
codegen_flags: <defaults>
</compile_context>

<pallas_src>
import functools

import jax
import jax.numpy as jnp
from jax.experimental import pallas as pl
from jax.experimental.pallas import tpu as pltpu


def bert_output_kernel(x_ref, w_ref, b_ref, res_ref, gamma_ref, beta_ref,
                       o_ref, *, eps, pre_norm, compute_dtype):
    # Cast the streamed activation tile to the MXU dtype in-kernel (VPU cast is
    # hidden under the matmul; avoids a separate wrapper-side pass over x).
    x = x_ref[...]
    if x.dtype != compute_dtype:
        x = x.astype(compute_dtype)
    # dense: x @ W (bf16 operands -> MXU, f32 accumulation) + bias
    y = jnp.dot(x, w_ref[...], preferred_element_type=jnp.float32)
    y = y + b_ref[...].astype(jnp.float32)            # (tm, H) + (1, H) broadcast
    # dropout (eval mode) = identity
    # residual add in f32
    z = y + res_ref[...].astype(jnp.float32)
    if pre_norm:
        o_ref[...] = z.astype(o_ref.dtype)
        return
    # LayerNorm over last dim (biased variance, eps inside rsqrt — matches torch)
    mean = jnp.mean(z, axis=-1, keepdims=True)
    centered = z - mean
    var = jnp.mean(centered * centered, axis=-1, keepdims=True)
    inv = jax.lax.rsqrt(var + eps)
    out = (centered * inv) * gamma_ref[...].astype(jnp.float32) \
        + beta_ref[...].astype(jnp.float32)
    o_ref[...] = out.astype(o_ref.dtype)


def bert_output(hidden_states, input_tensor, w, b, gamma, beta, *,
                eps=1e-12, pre_norm=False, block_m=512,
                compute_dtype=jnp.bfloat16,
                vmem_limit_bytes=48 * 1024 * 1024):
    """hidden_states: [B, S, I], input_tensor: [B, S, H], w: [I, H] (pre-transposed)."""
    B, S, I = hidden_states.shape
    H = input_tensor.shape[-1]
    M = B * S
    out_dtype = hidden_states.dtype

    # x streamed in original dtype (cast in-kernel); W resident as bf16; small
    # vectors kept f32 for the epilogue.
    x2 = hidden_states.reshape(M, I)
    w2 = w.astype(compute_dtype)
    r2 = input_tensor.reshape(M, H)
    b2 = b.reshape(1, H).astype(jnp.float32)
    g2 = gamma.reshape(1, H).astype(jnp.float32)
    be2 = beta.reshape(1, H).astype(jnp.float32)

    xb = jnp.dtype(x2.dtype).itemsize
    rb = jnp.dtype(r2.dtype).itemsize
    wb = jnp.dtype(w2.dtype).itemsize
    ob = jnp.dtype(out_dtype).itemsize

    def vmem_estimate(tm_):
        # double-buffered x / residual / output tiles, weight (allow for a
        # double-buffered fallback), LN vectors, f32/bf16 intermediates.
        return (2 * tm_ * I * xb + 2 * I * H * wb + 2 * tm_ * H * rb
                + 2 * tm_ * H * ob + 3 * H * 4
                + tm_ * I * 2 + 2 * tm_ * H * 4)

    # M tile: as big as block_m allows, shrunk to respect the VMEM budget.
    tm = min(block_m, M)
    while tm > 8 and vmem_estimate(tm) > int(0.8 * vmem_limit_bytes):
        tm = max(8, ((tm // 2 + 7) // 8) * 8)
    # Keep >= 2 grid steps when possible so the "parallel" axis actually shards
    # across both v7x TensorCores.
    if M > 8 and pl.cdiv(M, tm) < 2:
        tm = min(M, max(8, ((pl.cdiv(M, 2) + 7) // 8) * 8))
    grid = (pl.cdiv(M, tm),)

    kernel = functools.partial(bert_output_kernel, eps=eps, pre_norm=pre_norm,
                               compute_dtype=compute_dtype)

    def call(single_buffer_consts):
        const_kwargs = {}
        if single_buffer_consts and hasattr(pl, "Buffered"):
            # Constant index_map -> fetched once; keep a single VMEM copy
            # (no double-buffering of the resident weight / LN vectors).
            const_kwargs = dict(pipeline_mode=pl.Buffered(1))
        in_specs = [
            pl.BlockSpec((tm, I), lambda i: (i, 0)),                  # x tile (streamed)
            pl.BlockSpec((I, H), lambda i: (0, 0), **const_kwargs),   # W (resident)
            pl.BlockSpec((1, H), lambda i: (0, 0), **const_kwargs),   # bias
            pl.BlockSpec((tm, H), lambda i: (i, 0)),                  # residual tile
            pl.BlockSpec((1, H), lambda i: (0, 0), **const_kwargs),   # LN gamma
            pl.BlockSpec((1, H), lambda i: (0, 0), **const_kwargs),   # LN beta
        ]
        return pl.pallas_call(
            kernel,
            out_shape=jax.ShapeDtypeStruct((M, H), out_dtype),
            grid_spec=pltpu.PrefetchScalarGridSpec(
                num_scalar_prefetch=0,
                grid=grid,
                in_specs=in_specs,
                out_specs=pl.BlockSpec((tm, H), lambda i: (i, 0)),
            ),
            compiler_params=pltpu.CompilerParams(
                dimension_semantics=("parallel",),
                vmem_limit_bytes=vmem_limit_bytes),
        )(x2, w2, b2, r2, g2, be2)

    try:
        out2 = call(True)
    except Exception:
        # Fallback for jax versions without BlockSpec.pipeline_mode / Buffered(1)
        # single-buffering support; default double-buffering is still correct.
        out2 = call(False)

    return out2.reshape(B, S, H)


def reference(hidden_states, input_tensor, w, b, gamma, beta, *,
              eps=1e-12, pre_norm=False, compute_dtype=jnp.bfloat16):
    # Matches the kernel's numerics: bf16-rounded matmul operands, f32 accumulate,
    # f32 LayerNorm epilogue.
    x = hidden_states.astype(compute_dtype).astype(jnp.float32)
    wc = w.astype(compute_dtype).astype(jnp.float32)
    y = jnp.einsum("bsi,ih->bsh", x, wc,
                   precision=jax.lax.Precision.HIGHEST) + b.astype(jnp.float32)
    z = y + input_tensor.astype(jnp.float32)
    if pre_norm:
        return z.astype(hidden_states.dtype)
    mean = jnp.mean(z, axis=-1, keepdims=True)
    var = jnp.mean((z - mean) ** 2, axis=-1, keepdims=True)
    out = (z - mean) * jax.lax.rsqrt(var + eps) * gamma + beta
    return out.astype(hidden_states.dtype)


if __name__ == "__main__":
    # Small config: batch=2, seq=8, hidden_size=32, intermediate_size=128
    B, S, H, I = 2, 8, 32, 128
    eps = 1e-12

    key = jax.random.PRNGKey(0)
    k_x, k_r, k_w, k_b, k_g, k_be = jax.random.split(key, 6)
    hidden_states = jax.random.normal(k_x, (B, S, I), dtype=jnp.float32)
    input_tensor = jax.random.normal(k_r, (B, S, H), dtype=jnp.float32)
    # nn.Linear(I, H) weight stored transposed as [I, H]
    w = jax.random.normal(k_w, (I, H), dtype=jnp.float32) * 0.02
    b = jax.random.normal(k_b, (H,), dtype=jnp.float32) * 0.02
    gamma = 1.0 + 0.1 * jax.random.normal(k_g, (H,), dtype=jnp.float32)
    beta = 0.1 * jax.random.normal(k_be, (H,), dtype=jnp.float32)

    out = bert_output(hidden_states, input_tensor, w, b, gamma, beta, eps=eps)
    out = jax.block_until_ready(out)

    ref = reference(hidden_states, input_tensor, w, b, gamma, beta, eps=eps)
    assert out.shape == (B, S, H)
    err = float(jnp.max(jnp.abs(out.astype(jnp.float32) - ref.astype(jnp.float32))))
    assert jnp.allclose(out, ref, atol=2e-3, rtol=2e-3), \
        f"mismatch vs reference, max abs err={err}"

    print("KERNEL_OK")
</pallas_src>

<mosaic_0001>
module attributes {stable_mosaic.version = 11 : i64} {
  func.func @bert_output_kernel(%arg0: i32, %arg1: memref<8x128xf32, #tpu.memory_space<vmem>>, %arg2: memref<128x32xbf16, #tpu.memory_space<vmem>>, %arg3: memref<1x32xf32, #tpu.memory_space<vmem>>, %arg4: memref<8x32xf32, #tpu.memory_space<vmem>>, %arg5: memref<1x32xf32, #tpu.memory_space<vmem>>, %arg6: memref<1x32xf32, #tpu.memory_space<vmem>>, %arg7: memref<8x32xf32, #tpu.memory_space<vmem>>) attributes {dimension_semantics = [#tpu.dimension_semantics<parallel>], iteration_bounds = array<i64: 2>, scalar_prefetch = 0 : i64, scratch_operands = 0 : i64, tpu.core_type = #tpu.core_type<tc>, window_params = [{transform_indices = @transform_0, window_bounds = array<i64: 8, 128>}, {pipeline_mode = #tpu.pipeline_mode<synchronous>, transform_indices = @transform_1, window_bounds = array<i64: 128, 32>}, {pipeline_mode = #tpu.pipeline_mode<synchronous>, transform_indices = @transform_2, window_bounds = array<i64: 1, 32>}, {transform_indices = @transform_3, window_bounds = array<i64: 8, 32>}, {pipeline_mode = #tpu.pipeline_mode<synchronous>, transform_indices = @transform_4, window_bounds = array<i64: 1, 32>}, {pipeline_mode = #tpu.pipeline_mode<synchronous>, transform_indices = @transform_5, window_bounds = array<i64: 1, 32>}, {transform_indices = @transform_6, window_bounds = array<i64: 8, 32>}]} {
    %c0 = arith.constant 0 : index
    %c0_0 = arith.constant 0 : index
    %0 = vector.load %arg1[%c0, %c0_0] : memref<8x128xf32, #tpu.memory_space<vmem>>, vector<8x128xf32>
    %1 = arith.truncf %0 : vector<8x128xf32> to vector<8x128xbf16>
    %c0_1 = arith.constant 0 : index
    %c0_2 = arith.constant 0 : index
    %2 = vector.load %arg2[%c0_1, %c0_2] : memref<128x32xbf16, #tpu.memory_space<vmem>>, vector<128x32xbf16>
    %cst = arith.constant dense<0.000000e+00> : vector<8x32xf32>
    %3 = tpu.matmul %1, %2, %cst {dimension_numbers = #tpu.dot_dimension_numbers<[1], [0], [0], [1], [0, 0, 1, 1], [], []>} : vector<8x128xbf16>, vector<128x32xbf16>, vector<8x32xf32> -> vector<8x32xf32>
    %c0_3 = arith.constant 0 : index
    %c0_4 = arith.constant 0 : index
    %4 = vector.load %arg3[%c0_3, %c0_4] : memref<1x32xf32, #tpu.memory_space<vmem>>, vector<1x32xf32>
    %5 = vector.broadcast %4 : vector<1x32xf32> to vector<8x32xf32>
    %6 = arith.addf %3, %5 : vector<8x32xf32>
    %c0_5 = arith.constant 0 : index
    %c0_6 = arith.constant 0 : index
    %7 = vector.load %arg4[%c0_5, %c0_6] : memref<8x32xf32, #tpu.memory_space<vmem>>, vector<8x32xf32>
    %8 = arith.addf %6, %7 : vector<8x32xf32>
    %cst_7 = arith.constant dense<0.000000e+00> : vector<8xf32>
    %9 = vector.multi_reduction <add>, %8, %cst_7 [1] : vector<8x32xf32> to vector<8xf32>
    %10 = vector.shape_cast %9 : vector<8xf32> to vector<8x1xf32>
    %cst_8 = arith.constant 3.200000e+01 : f32
    %11 = vector.broadcast %cst_8 : f32 to vector<8x1xf32>
    %12 = arith.divf %10, %11 : vector<8x1xf32>
    %13 = vector.broadcast %12 : vector<8x1xf32> to vector<8x32xf32>
    %14 = arith.subf %8, %13 : vector<8x32xf32>
    %15 = arith.mulf %14, %14 : vector<8x32xf32>
    %cst_9 = arith.constant dense<0.000000e+00> : vector<8xf32>
    %16 = vector.multi_reduction <add>, %15, %cst_9 [1] : vector<8x32xf32> to vector<8xf32>
    %17 = vector.shape_cast %16 : vector<8xf32> to vector<8x1xf32>
    %cst_10 = arith.constant 3.200000e+01 : f32
    %18 = vector.broadcast %cst_10 : f32 to vector<8x1xf32>
    %19 = arith.divf %17, %18 : vector<8x1xf32>
    %cst_11 = arith.constant 9.99999996E-13 : f32
    %20 = vector.broadcast %cst_11 : f32 to vector<8x1xf32>
    %21 = arith.addf %19, %20 : vector<8x1xf32>
    %22 = math.rsqrt %21 : vector<8x1xf32>
    %23 = vector.broadcast %22 : vector<8x1xf32> to vector<8x32xf32>
    %24 = arith.mulf %14, %23 : vector<8x32xf32>
    %c0_12 = arith.constant 0 : index
    %c0_13 = arith.constant 0 : index
    %25 = vector.load %arg5[%c0_12, %c0_13] : memref<1x32xf32, #tpu.memory_space<vmem>>, vector<1x32xf32>
    %26 = vector.broadcast %25 : vector<1x32xf32> to vector<8x32xf32>
    %27 = arith.mulf %24, %26 : vector<8x32xf32>
    %c0_14 = arith.constant 0 : index
    %c0_15 = arith.constant 0 : index
    %28 = vector.load %arg6[%c0_14, %c0_15] : memref<1x32xf32, #tpu.memory_space<vmem>>, vector<1x32xf32>
    %29 = vector.broadcast %28 : vector<1x32xf32> to vector<8x32xf32>
    %30 = arith.addf %27, %29 : vector<8x32xf32>
    %c0_16 = arith.constant 0 : index
    %c0_17 = arith.constant 0 : index
    %31 = vector.load %arg7[%c0_16, %c0_17] : memref<8x32xf32, #tpu.memory_space<vmem>>, vector<8x32xf32>
    tpu.vector_store %arg7[%c0_16, %c0_17], %30 {strides = array<i32>} : memref<8x32xf32, #tpu.memory_space<vmem>>, vector<8x32xf32>,
    return
  }
  func.func @transform_0(%arg0: i32) -> (i32, i32) {
    %c0_i32 = arith.constant 0 : i32
    %c0_i32_0 = arith.constant 0 : i32
    return %arg0, %c0_i32 : i32, i32
  }
  func.func @transform_1(%arg0: i32) -> (i32, i32) {
    %c0_i32 = arith.constant 0 : i32
    %c0_i32_0 = arith.constant 0 : i32
    %c0_i32_1 = arith.constant 0 : i32
    return %c0_i32, %c0_i32_0 : i32, i32
  }
  func.func @transform_2(%arg0: i32) -> (i32, i32) {
    %c0_i32 = arith.constant 0 : i32
    %c0_i32_0 = arith.constant 0 : i32
    %c0_i32_1 = arith.constant 0 : i32
    return %c0_i32, %c0_i32_0 : i32, i32
  }
  func.func @transform_3(%arg0: i32) -> (i32, i32) {
    %c0_i32 = arith.constant 0 : i32
    %c0_i32_0 = arith.constant 0 : i32
    return %arg0, %c0_i32 : i32, i32
  }
  func.func @transform_4(%arg0: i32) -> (i32, i32) {
    %c0_i32 = arith.constant 0 : i32
    %c0_i32_0 = arith.constant 0 : i32
    %c0_i32_1 = arith.constant 0 : i32
    return %c0_i32, %c0_i32_0 : i32, i32
  }
  func.func @transform_5(%arg0: i32) -> (i32, i32) {
    %c0_i32 = arith.constant 0 : i32
    %c0_i32_0 = arith.constant 0 : i32
    %c0_i32_1 = arith.constant 0 : i32
    return %c0_i32, %c0_i32_0 : i32, i32
  }
  func.func @transform_6(%arg0: i32) -> (i32, i32) {
    %c0_i32 = arith.constant 0 : i32
    %c0_i32_0 = arith.constant 0 : i32
    return %arg0, %c0_i32 : i32, i32
  }
}

module attributes {stable_mosaic.version = 11 : i64} {
  func.func @bert_output_kernel(%arg0: i32, %arg1: memref<8x128xf32, #tpu.memory_space<vmem>>, %arg2: memref<128x32xbf16, #tpu.memory_space<vmem>>, %arg3: memref<1x32xf32, #tpu.memory_space<vmem>>, %arg4: memref<8x32xf32, #tpu.memory_space<vmem>>, %arg5: memref<1x32xf32, #tpu.memory_space<vmem>>, %arg6: memref<1x32xf32, #tpu.memory_space<vmem>>, %arg7: memref<8x32xf32, #tpu.memory_space<vmem>>) attributes {dimension_semantics = [#tpu.dimension_semantics<parallel>], iteration_bounds = array<i64: 2>, scalar_prefetch = 0 : i64, scratch_operands = 0 : i64, tpu.core_type = #tpu.core_type<tc>, window_params = [{transform_indices = @transform_0, window_bounds = array<i64: 8, 128>}, {pipeline_mode = #tpu.pipeline_mode<synchronous>, transform_indices = @transform_1, window_bounds = array<i64: 128, 32>}, {pipeline_mode = #tpu.pipeline_mode<synchronous>, transform_indices = @transform_2, window_bounds = array<i64: 1, 32>}, {transform_indices = @transform_3, window_bounds = array<i64: 8, 32>}, {pipeline_mode = #tpu.pipeline_mode<synchronous>, transform_indices = @transform_4, window_bounds = array<i64: 1, 32>}, {pipeline_mode = #tpu.pipeline_mode<synchronous>, transform_indices = @transform_5, window_bounds = array<i64: 1, 32>}, {transform_indices = @transform_6, window_bounds = array<i64: 8, 32>}]} {
    %c0 = arith.constant 0 : index
    %c0_0 = arith.constant 0 : index
    %0 = vector.load %arg1[%c0, %c0_0] : memref<8x128xf32, #tpu.memory_space<vmem>>, vector<8x128xf32>
    %1 = arith.truncf %0 : vector<8x128xf32> to vector<8x128xbf16>
    %c0_1 = arith.constant 0 : index
    %c0_2 = arith.constant 0 : index
    %2 = vector.load %arg2[%c0_1, %c0_2] : memref<128x32xbf16, #tpu.memory_space<vmem>>, vector<128x32xbf16>
    %cst = arith.constant dense<0.000000e+00> : vector<8x32xf32>
    %3 = tpu.matmul %1, %2, %cst {dimension_numbers = #tpu.dot_dimension_numbers<[1], [0], [0], [1], [0, 0, 1, 1], [], []>} : vector<8x128xbf16>, vector<128x32xbf16>, vector<8x32xf32> -> vector<8x32xf32>
    %c0_3 = arith.constant 0 : index
    %c0_4 = arith.constant 0 : index
    %4 = vector.load %arg3[%c0_3, %c0_4] : memref<1x32xf32, #tpu.memory_space<vmem>>, vector<1x32xf32>
    %5 = vector.broadcast %4 : vector<1x32xf32> to vector<8x32xf32>
    %6 = arith.addf %3, %5 : vector<8x32xf32>
    %c0_5 = arith.constant 0 : index
    %c0_6 = arith.constant 0 : index
    %7 = vector.load %arg4[%c0_5, %c0_6] : memref<8x32xf32, #tpu.memory_space<vmem>>, vector<8x32xf32>
    %8 = arith.addf %6, %7 : vector<8x32xf32>
    %cst_7 = arith.constant dense<0.000000e+00> : vector<8xf32>
    %9 = vector.multi_reduction <add>, %8, %cst_7 [1] : vector<8x32xf32> to vector<8xf32>
    %10 = vector.shape_cast %9 : vector<8xf32> to vector<8x1xf32>
    %cst_8 = arith.constant 3.200000e+01 : f32
    %11 = vector.broadcast %cst_8 : f32 to vector<8x1xf32>
    %12 = arith.divf %10, %11 : vector<8x1xf32>
    %13 = vector.broadcast %12 : vector<8x1xf32> to vector<8x32xf32>
    %14 = arith.subf %8, %13 : vector<8x32xf32>
    %15 = arith.mulf %14, %14 : vector<8x32xf32>
    %cst_9 = arith.constant dense<0.000000e+00> : vector<8xf32>
    %16 = vector.multi_reduction <add>, %15, %cst_9 [1] : vector<8x32xf32> to vector<8xf32>
    %17 = vector.shape_cast %16 : vector<8xf32> to vector<8x1xf32>
    %cst_10 = arith.constant 3.200000e+01 : f32
    %18 = vector.broadcast %cst_10 : f32 to vector<8x1xf32>
    %19 = arith.divf %17, %18 : vector<8x1xf32>
    %cst_11 = arith.constant 9.99999996E-13 : f32
    %20 = vector.broadcast %cst_11 : f32 to vector<8x1xf32>
    %21 = arith.addf %19, %20 : vector<8x1xf32>
    %22 = math.rsqrt %21 : vector<8x1xf32>
    %23 = vector.broadcast %22 : vector<8x1xf32> to vector<8x32xf32>
    %24 = arith.mulf %14, %23 : vector<8x32xf32>
    %c0_12 = arith.constant 0 : index
    %c0_13 = arith.constant 0 : index
    %25 = vector.load %arg5[%c0_12, %c0_13] : memref<1x32xf32, #tpu.memory_space<vmem>>, vector<1x32xf32>
    %26 = vector.broadcast %25 : vector<1x32xf32> to vector<8x32xf32>
    %27 = arith.mulf %24, %26 : vector<8x32xf32>
    %c0_14 = arith.constant 0 : index
    %c0_15 = arith.constant 0 : index
    %28 = vector.load %arg6[%c0_14, %c0_15] : memref<1x32xf32, #tpu.memory_space<vmem>>, vector<1x32xf32>
    %29 = vector.broadcast %28 : vector<1x32xf32> to vector<8x32xf32>
    %30 = arith.addf %27, %29 : vector<8x32xf32>
    %c0_16 = arith.constant 0 : index
    %c0_17 = arith.constant 0 : index
    %31 = vector.load %arg7[%c0_16, %c0_17] : memref<8x32xf32, #tpu.memory_space<vmem>>, vector<8x32xf32>
    tpu.vector_store %arg7[%c0_16, %c0_17], %30 {strides = array<i32>} : memref<8x32xf32, #tpu.memory_space<vmem>>, vector<8x32xf32>,
    return
  }
  func.func @transform_0(%arg0: i32) -> (i32, i32) {
    %c0_i32 = arith.constant 0 : i32
    %c0_i32_0 = arith.constant 0 : i32
    return %arg0, %c0_i32 : i32, i32
  }
  func.func @transform_1(%arg0: i32) -> (i32, i32) {
    %c0_i32 = arith.constant 0 : i32
    %c0_i32_0 = arith.constant 0 : i32
    %c0_i32_1 = arith.constant 0 : i32
    return %c0_i32, %c0_i32_0 : i32, i32
  }
  func.func @transform_2(%arg0: i32) -> (i32, i32) {
    %c0_i32 = arith.constant 0 : i32
    %c0_i32_0 = arith.constant 0 : i32
    %c0_i32_1 = arith.constant 0 : i32
    return %c0_i32, %c0_i32_0 : i32, i32
  }
  func.func @transform_3(%arg0: i32) -> (i32, i32) {
    %c0_i32 = arith.constant 0 : i32
    %c0_i32_0 = arith.constant 0 : i32
    return %arg0, %c0_i32 : i32, i32
  }
  func.func @transform_4(%arg0: i32) -> (i32, i32) {
    %c0_i32 = arith.constant 0 : i32
    %c0_i32_0 = arith.constant 0 : i32
    %c0_i32_1 = arith.constant 0 : i32
    return %c0_i32, %c0_i32_0 : i32, i32
  }
  func.func @transform_5(%arg0: i32) -> (i32, i32) {
    %c0_i32 = arith.constant 0 : i32
    %c0_i32_0 = arith.constant 0 : i32
    %c0_i32_1 = arith.constant 0 : i32
    return %c0_i32, %c0_i32_0 : i32, i32
  }
  func.func @transform_6(%arg0: i32) -> (i32, i32) {
    %c0_i32 = arith.constant 0 : i32
    %c0_i32_0 = arith.constant 0 : i32
    return %arg0, %c0_i32 : i32, i32
  }
}

</mosaic_0001>

<bundles_post_ra>
// kernel: tpu_custom_call.1
= control target key start
LH: loop header
LB: loop body
LE: loop exit
PB: predicated region body
PF: predicated region fallthrough
CT: control target
= control target key end

     0   :  { %11 = vsyncpa [#allocation3], 0  ;;  %s825_s0 = inlined_call_operand.vmem [shape: f32[16,128], index: 0, kind: input, shape index: {}]   ;;  %s826_s1 = inlined_call_operand.vmem [shape: bf16[128,32], index: 1, kind: input, shape index: {}]   ;;  %s827_s2 = inlined_call_operand.vmem [shape: f32[1,32], index: 2, kind: input, shape index: {}]   ;;  %s828_s3 = inlined_call_operand.vmem [shape: f32[16,32], index: 3, kind: input, shape index: {}]   ;;  %s829_s4 = inlined_call_operand.vmem [shape: f32[1,32], index: 4, kind: input, shape index: {}]   ;;  %s830_s5 = inlined_call_operand.vmem [shape: f32[1,32], index: 5, kind: input, shape index: {}]   ;;  %s831_s6 = inlined_call_operand.hbm [shape: f32[16,32], index: 6, kind: output, shape index: {}]  }
   0x1   :  { %13 = vsyncpa [#allocation3 + $0x1], 0  ;;  %s699_s21 = smov 0   ;;  %s701_s22 = smov 0  }
   0x2   :  { %s703_s23 = smov 0   ;;  %s705_s24 = smov 0  }
   0x3 LB: > { %s720_s25 = sadd.s32 4294967295, %s659_s24   ;;  %s497_s26 = sadd.s32 4294967294, %s659_s24   ;;  %s659_s24 = sphi %s705_s24, %s837_s24   ;;  %s655_s23 = sphi %s703_s23, %s836_s23   ;;  %s651_s22 = sphi %s701_s22, %s835_s22   ;;  %s647_s21 = sphi %s699_s21, %s834_s21  }
   0x4   : > { %s724_s27 = sadd.s32 1, %s659_s24   ;;  %s162_s28 = sadd.s32 1, %s655_s23 }
   0x5   : > { %s159_s29 = ssub.s32 %s659_s24, %s724_s27  ;;  %p172_p0 = scmp.ne.s32.totalorder %s655_s23, %s651_s22 }
   0x6   : > { %p160_p1 = scmp.eq.s32.totalorder %s159_s29, 0  ;;  %p173_p2 = scmp.eq.s32.totalorder %s720_s25, 1 }
   0x7   : > { %p178_p3 = scmp.ne.s32.totalorder %s651_s22, %s647_s21  ;;  %p179_p4 = scmp.eq.s32.totalorder %s497_s26, 1 }
   0x8   : > { %s735_s30 = scalar_select %p160_p1, %s655_s23, %s162_s28  }
   0x9   : > { %p737_p5 = por %p173_p2, %p172_p0  ;;  %p741_p6 = por %p179_p4, %p178_p3 }
   0xa   : > { %p500_p7 = scmp.ge.s32.totalorder %s659_s24, 1  ;;  %p223_p8 = scmp.lt.s32.totalorder %s659_s24, 3 }
   0xc   : > { %p224_p9 = pnand %p500_p7, %p223_p8 }
   0xd   : > { %p256_p10 = scmp.lt.s32.totalorder (!%p224_p9), %s720_s25, 1  ;;  %s253_s20 = sand.u32 (!%p224_p9), 1, %s651_s22  }
   0xe   : > { %227 = sbr.rel (%p224_p9) target bundleno = 570 (0x23a), region = 44  ;;  %s501_s26 = sshll.u32 (!%p224_p9), %s253_s20, 3 }
   0xf   : > { %s516_s11 = sshll.u32 (!%p224_p9), %s720_s25, 7 }
  0x10   : > { %s424_s16 = scalar_lea.hbm (!%p224_p9), %s831_s6, %s516_s11 }
  0x13   : > { %v589_v0 = vld [vmem:[%s826_s1 + $0x38] sm:$0xff]   ;;  %v661_v1 = vmov 0.0   ;;  %v590_v2 = vld [vmem:[%s826_s1 + $0x30] sm:$0xff]   ;;  %vm662_vm0 = vmmov 0   ;;  %v591_v3 = vld [vmem:[%s826_s1 + $0x28] sm:$0xff]   ;;  %s257_s19 = scalar_select %p256_p10, %s720_s25, 1 }
  0x14   : > { %528 = vmatprep.subr.bf16.mxu0 %v661_v1  ;;  %544 = vmatprep.mubr.msk.bf16.mxu0 %vm662_vm0, %v661_v1  ;;  %v592_v4 = vld [vmem:[%s826_s1 + $0x20] sm:$0xff]   ;;  %v593_v5 = vld [vmem:[%s826_s1 + $0x18] sm:$0xff]   ;;  %v594_v6 = vld [vmem:[%s826_s1 + $0x10] sm:$0xff]   ;;  %vm380_vm1 = vcmask 261120  }
  0x15   : > { %529 = vmatpush3.bf16.msra.mxu0 %v589_v0  ;;  %s502_s28 = sshll.u32 %s257_s19, 3  ;;  %v595_v7 = vld [vmem:[%s826_s1 + $0x8] sm:$0xff]   ;;  %v596_v8 = vld [vmem:[%s826_s1] sm:$0xff]   ;;  %s663_s19 = smov [#allocation2]  }
  0x16   : > { %530 = vmatprep.subr.bf16.mxu0 %v661_v1  ;;  %s259_s12 = scalar_lea.vmem %s825_s0, %s502_s28  ;;  %s263_s17 = scalar_lea.vmem %s828_s3, %s502_s28  ;;  %v504_v11 = vld [vmem:[%s827_s2] ss:$0 sm:$0xff] }
  0x17   : > { %v265_v9 = vld [vmem:[%s259_s12] sm:$0xff]  ;;  %s255_s12 = scalar_lea.vmem [#allocation2], %s501_s26  ;;  %s603_s28 = sshll.u32 %s663_s19, 4  ;;  %s604_s28 = int_to_ptr.vmem [resolvable:$false] %s603_s28 }
  0x18   : > { %v266_v10 = vpack.c.bf16 %v265_v9, %v265_v9  ;;  %v378_v13 = vld [vmem:[%s263_s17] sm:$0xff]  ;;  %s426_s13 = sshll.u32 %s255_s12, 4  ;;  %s413_s17 = scalar_lea.sflag [#allocation3], %s253_s20  ;;  %s427_s13 = int_to_ptr.vmem [resolvable:$true] %s426_s13 }
  0x19   : > { %531 = vmatpush3.bf16.msra.mxu0 %v590_v2  ;;  %v513_v29 = vld [vmem:[%s829_s4] ss:$0 sm:$0xff]  ;;  %s599_s18 = scalar_lea.vmem %s427_s13, 128  ;;  %s605_s25 = scalar_lea.vmem %s604_s28, 256 }
  0x1a   : > { %532 = vmatprep.subr.bf16.mxu0 %v661_v1  ;;  %v514_v31 = vld [vmem:[%s830_s5] ss:$0 sm:$0xff]  ;;  %p600_p11 = scmp.ne.s32.totalorder %s427_s13, %s599_s18  ;;  %p606_p0 = scmp.lt.s32.totalorder %s427_s13, %s604_s28 }
  0x1b   : > { %p607_p1 = scmp.lt.s32.totalorder %s605_s25, %s599_s18 }
  0x1c   : > { %p601_p12 = pnand %p600_p11, %p737_p5 }
  0x1d   : > { %533 = vmatpush3.bf16.msra.mxu0 %v591_v3  ;;  %p608_p2 = por %p607_p1, %p606_p0 }
  0x1e   : > { %534 = vmatprep.subr.bf16.mxu0 %v661_v1  ;;  %p602_p13 = pneg %p601_p12 }
  0x20   : > { %p609_p3 = pnand %p608_p2, %p602_p13 }
  0x21   : > { %535 = vmatpush3.bf16.msra.mxu0 %v592_v4 }
  0x22   : > { %536 = vmatprep.subr.bf16.mxu0 %v661_v1 }
  0x25   : > { %537 = vmatpush3.bf16.msra.mxu0 %v593_v5 }
  0x26   : > { %538 = vmatprep.subr.bf16.mxu0 %v661_v1 }
  0x29   : > { %539 = vmatpush3.bf16.msra.mxu0 %v594_v6 }
  0x2a   : > { %540 = vmatprep.subr.bf16.mxu0 %v661_v1 }
  0x2d   : > { %541 = vmatpush3.bf16.msra.mxu0 %v595_v7 }
  0x2e   : > { %542 = vmatprep.subr.bf16.mxu0 %v661_v1 }
  0x31   : > { %543 = vmatpush3.bf16.msra.mxu0 %v596_v8 }
  0x34   : > { %545 = vmatmul.mubr.bf16.vlgmr.msra.gmra.mxu0 %v266_v10 }
  0xf4   : > { %v372_v12 = vpop.f32.mrf.mxu0 }
  0xf5   : > { %v373_v14 = vadd.f32 %v504_v11, %v372_v12 }
  0xf6   : > { %v546_v15 = vpop.f32.mrf.mxu0 }
  0xf7   : > { %v379_v16 = vadd.f32 %v378_v13, %v373_v14 }
  0xf8   : > { %v375_v17 = vpop.f32.mrf.mxu0 }
  0xf9   : > { %v381_v18 = vsel %vm380_vm1, %v379_v16, 0.0 }
  0xfa   : > { %382 = vadd.xlane.f32.xlu0 %v381_v18  ;;  %v547_v19 = vpop.f32.mrf.mxu0 }
 0x183   : > { %v383_v20 = vpop.xlane.xlu0 %382 }
 0x184   : > { %v385_v21 = vmul.f32 0.03125, %v383_v20 }
 0x186   : > { %v386_v22 = vsub.f32 %v379_v16, %v385_v21 }
 0x188   : > { %v387_v23 = vmul.f32 %v386_v22, %v386_v22 }
 0x18a   : > { %v388_v24 = vsel %vm380_vm1, %v387_v23, 0.0 }
 0x18b   : > { %389 = vadd.xlane.f32.xlu0 %v388_v24 }
 0x214   : > { %v390_v25 = vpop.xlane.xlu0 %389 }
 0x215   : > { %v391_v26 = vmul.f32 0.03125, %v390_v25 }
 0x217   : > { %v392_v27 = vadd.f32 1e-12, %v391_v26 }
 0x219   : > { %597 = vrsqrt.f32 %v392_v27 }
 0x226   : > { %v598_v28 = vpop.eup %597 }
 0x227   : > { %v394_v30 = vmul.f32 %v598_v28, %v386_v22 }
 0x229   : > { %v402_v32 = vmul.f32 %v513_v29, %v394_v30 }
 0x22b   : > { %v410_v33 = vadd.f32 %v514_v31, %v402_v32 }
 0x22d   : > { %411 = vst.msk [vmem:[%s255_s12] sm:$0xff] %vm380_vm1, %v410_v33 }
 0x22e   : > { %612 = shalt.err (!%p609_p3)
}
 0x22f   : > { %s613_s26 = scalar_lea.hbm %s424_s16, 128  ;;  %s617_s9 = scalar_lea.hbm %s831_s6, 256 }
 0x230   : > { %p614_p4 = scmp.ne.s32.totalorder %s424_s16, %s613_s26  ;;  %p618_p9 = scmp.lt.s32.totalorder %s424_s16, %s831_s6 }
 0x231   : > { %p619_p10 = scmp.lt.s32.totalorder %s617_s9, %s613_s26 }
 0x232   : > { %p615_p7 = pnand %p614_p4, %p737_p5 }
 0x233   : > { %p620_p11 = por %p619_p10, %p618_p9 }
 0x234   : > { %p616_p8 = pneg %p615_p7 }
 0x236   : > { %p621_p12 = pnand %p620_p11, %p616_p8 }
 0x238   : > { %624 = shalt.err (!%p621_p12)
}
 0x239   : > { %548 = dma.vmem_to_hbm [thread:$0]  (%p737_p5), %s427_s13, 128, %s424_s16, %s413_s17  }
 0x23a PF: > { %p554_p13 = scmp.ge.s32.totalorder %s659_s24, 2  ;;  %s438_s12 = sand.u32 1, %s647_s21  }
 0x23b   : > { %s439_s14 = scalar_lea.sflag [#allocation3], %s438_s12 }
 0x23c   : > { %p551_p0 = pnand %p554_p13, %p741_p6 }
 0x23e   : > { %p552_p1 = pneg %p551_p0 }
 0x240   : > { %642 = dma.done.wait (%p552_p1), %s439_s14, 128  }
 0x241   : > { %644 = vsyncadd (%p552_p1), %s439_s14, 4294967168  ;;  %p16_p2 = scmp.ge.s32.totalorder %s724_s27, 4   ;;  %s834_s21 = smov %s651_s22 }
 0x242   : > { %s835_s22 = smov %s655_s23  ;;  %s836_s23 = smov %s735_s30 }
 0x243   : > { %s837_s24 = smov %s724_s27  ;;  %18 = sbr.rel (!%p16_p2) target bundleno = 3 (0x3), region = 82 }
 0x248   :  { %444 = vsyncpa [#allocation3], 1 }
 0x249   :  { %446 = vsyncpa [#allocation3 + $0x1], 1 }

// kernel: tpu_custom_call.1
= control target key start
LH: loop header
LB: loop body
LE: loop exit
PB: predicated region body
PF: predicated region fallthrough
CT: control target
= control target key end

     0   :  { %11 = vsyncpa [#allocation3], 0  ;;  %s825_s0 = inlined_call_operand.vmem [shape: f32[16,128], index: 0, kind: input, shape index: {}]   ;;  %s826_s1 = inlined_call_operand.vmem [shape: bf16[128,32], index: 1, kind: input, shape index: {}]   ;;  %s827_s2 = inlined_call_operand.vmem [shape: f32[1,32], index: 2, kind: input, shape index: {}]   ;;  %s828_s3 = inlined_call_operand.vmem [shape: f32[16,32], index: 3, kind: input, shape index: {}]   ;;  %s829_s4 = inlined_call_operand.vmem [shape: f32[1,32], index: 4, kind: input, shape index: {}]   ;;  %s830_s5 = inlined_call_operand.vmem [shape: f32[1,32], index: 5, kind: input, shape index: {}]   ;;  %s831_s6 = inlined_call_operand.hbm [shape: f32[16,32], index: 6, kind: output, shape index: {}]  }
   0x1   :  { %13 = vsyncpa [#allocation3 + $0x1], 0  ;;  %s699_s21 = smov 0   ;;  %s701_s22 = smov 0  }
   0x2   :  { %s703_s23 = smov 0   ;;  %s705_s24 = smov 0  }
   0x3 LB: > { %s720_s25 = sadd.s32 4294967295, %s659_s24   ;;  %s497_s26 = sadd.s32 4294967294, %s659_s24   ;;  %s659_s24 = sphi %s705_s24, %s837_s24   ;;  %s655_s23 = sphi %s703_s23, %s836_s23   ;;  %s651_s22 = sphi %s701_s22, %s835_s22   ;;  %s647_s21 = sphi %s699_s21, %s834_s21  }
   0x4   : > { %s724_s27 = sadd.s32 1, %s659_s24   ;;  %s162_s28 = sadd.s32 1, %s655_s23 }
   0x5   : > { %s159_s29 = ssub.s32 %s659_s24, %s724_s27  ;;  %p172_p0 = scmp.ne.s32.totalorder %s655_s23, %s651_s22 }
   0x6   : > { %p160_p1 = scmp.eq.s32.totalorder %s159_s29, 0  ;;  %p173_p2 = scmp.eq.s32.totalorder %s720_s25, 1 }
   0x7   : > { %p178_p3 = scmp.ne.s32.totalorder %s651_s22, %s647_s21  ;;  %p179_p4 = scmp.eq.s32.totalorder %s497_s26, 1 }
   0x8   : > { %s735_s30 = scalar_select %p160_p1, %s655_s23, %s162_s28  }
   0x9   : > { %p737_p5 = por %p173_p2, %p172_p0  ;;  %p741_p6 = por %p179_p4, %p178_p3 }
   0xa   : > { %p500_p7 = scmp.ge.s32.totalorder %s659_s24, 1  ;;  %p223_p8 = scmp.lt.s32.totalorder %s659_s24, 3 }
   0xc   : > { %p224_p9 = pnand %p500_p7, %p223_p8 }
   0xd   : > { %p256_p10 = scmp.lt.s32.totalorder (!%p224_p9), %s720_s25, 1  ;;  %s253_s20 = sand.u32 (!%p224_p9), 1, %s651_s22  }
   0xe   : > { %227 = sbr.rel (%p224_p9) target bundleno = 570 (0x23a), region = 44  ;;  %s501_s26 = sshll.u32 (!%p224_p9), %s253_s20, 3 }
   0xf   : > { %s516_s11 = sshll.u32 (!%p224_p9), %s720_s25, 7 }
  0x10   : > { %s424_s16 = scalar_lea.hbm (!%p224_p9), %s831_s6, %s516_s11 }
  0x13   : > { %v589_v0 = vld [vmem:[%s826_s1 + $0x38] sm:$0xff]   ;;  %v661_v1 = vmov 0.0   ;;  %v590_v2 = vld [vmem:[%s826_s1 + $0x30] sm:$0xff]   ;;  %vm662_vm0 = vmmov 0   ;;  %v591_v3 = vld [vmem:[%s826_s1 + $0x28] sm:$0xff]   ;;  %s257_s19 = scalar_select %p256_p10, %s720_s25, 1 }
  0x14   : > { %528 = vmatprep.subr.bf16.mxu0 %v661_v1  ;;  %544 = vmatprep.mubr.msk.bf16.mxu0 %vm662_vm0, %v661_v1  ;;  %v592_v4 = vld [vmem:[%s826_s1 + $0x20] sm:$0xff]   ;;  %v593_v5 = vld [vmem:[%s826_s1 + $0x18] sm:$0xff]   ;;  %v594_v6 = vld [vmem:[%s826_s1 + $0x10] sm:$0xff]   ;;  %vm380_vm1 = vcmask 261120  }
  0x15   : > { %529 = vmatpush3.bf16.msra.mxu0 %v589_v0  ;;  %s502_s28 = sshll.u32 %s257_s19, 3  ;;  %v595_v7 = vld [vmem:[%s826_s1 + $0x8] sm:$0xff]   ;;  %v596_v8 = vld [vmem:[%s826_s1] sm:$0xff]   ;;  %s663_s19 = smov [#allocation2]  }
  0x16   : > { %530 = vmatprep.subr.bf16.mxu0 %v661_v1  ;;  %s259_s12 = scalar_lea.vmem %s825_s0, %s502_s28  ;;  %s263_s17 = scalar_lea.vmem %s828_s3, %s502_s28  ;;  %v504_v11 = vld [vmem:[%s827_s2] ss:$0 sm:$0xff] }
  0x17   : > { %v265_v9 = vld [vmem:[%s259_s12] sm:$0xff]  ;;  %s255_s12 = scalar_lea.vmem [#allocation2], %s501_s26  ;;  %s603_s28 = sshll.u32 %s663_s19, 4  ;;  %s604_s28 = int_to_ptr.vmem [resolvable:$false] %s603_s28 }
  0x18   : > { %v266_v10 = vpack.c.bf16 %v265_v9, %v265_v9  ;;  %v378_v13 = vld [vmem:[%s263_s17] sm:$0xff]  ;;  %s426_s13 = sshll.u32 %s255_s12, 4  ;;  %s413_s17 = scalar_lea.sflag [#allocation3], %s253_s20  ;;  %s427_s13 = int_to_ptr.vmem [resolvable:$true] %s426_s13 }
  0x19   : > { %531 = vmatpush3.bf16.msra.mxu0 %v590_v2  ;;  %v513_v29 = vld [vmem:[%s829_s4] ss:$0 sm:$0xff]  ;;  %s599_s18 = scalar_lea.vmem %s427_s13, 128  ;;  %s605_s25 = scalar_lea.vmem %s604_s28, 256 }
  0x1a   : > { %532 = vmatprep.subr.bf16.mxu0 %v661_v1  ;;  %v514_v31 = vld [vmem:[%s830_s5] ss:$0 sm:$0xff]  ;;  %p600_p11 = scmp.ne.s32.totalorder %s427_s13, %s599_s18  ;;  %p606_p0 = scmp.lt.s32.totalorder %s427_s13, %s604_s28 }
  0x1b   : > { %p607_p1 = scmp.lt.s32.totalorder %s605_s25, %s599_s18 }
  0x1c   : > { %p601_p12 = pnand %p600_p11, %p737_p5 }
  0x1d   : > { %533 = vmatpush3.bf16.msra.mxu0 %v591_v3  ;;  %p608_p2 = por %p607_p1, %p606_p0 }
  0x1e   : > { %534 = vmatprep.subr.bf16.mxu0 %v661_v1  ;;  %p602_p13 = pneg %p601_p12 }
  0x20   : > { %p609_p3 = pnand %p608_p2, %p602_p13 }
  0x21   : > { %535 = vmatpush3.bf16.msra.mxu0 %v592_v4 }
  0x22   : > { %536 = vmatprep.subr.bf16.mxu0 %v661_v1 }
  0x25   : > { %537 = vmatpush3.bf16.msra.mxu0 %v593_v5 }
  0x26   : > { %538 = vmatprep.subr.bf16.mxu0 %v661_v1 }
  0x29   : > { %539 = vmatpush3.bf16.msra.mxu0 %v594_v6 }
  0x2a   : > { %540 = vmatprep.subr.bf16.mxu0 %v661_v1 }
  0x2d   : > { %541 = vmatpush3.bf16.msra.mxu0 %v595_v7 }
  0x2e   : > { %542 = vmatprep.subr.bf16.mxu0 %v661_v1 }
  0x31   : > { %543 = vmatpush3.bf16.msra.mxu0 %v596_v8 }
  0x34   : > { %545 = vmatmul.mubr.bf16.vlgmr.msra.gmra.mxu0 %v266_v10 }
  0xf4   : > { %v372_v12 = vpop.f32.mrf.mxu0 }
  0xf5   : > { %v373_v14 = vadd.f32 %v504_v11, %v372_v12 }
  0xf6   : > { %v546_v15 = vpop.f32.mrf.mxu0 }
  0xf7   : > { %v379_v16 = vadd.f32 %v378_v13, %v373_v14 }
  0xf8   : > { %v375_v17 = vpop.f32.mrf.mxu0 }
  0xf9   : > { %v381_v18 = vsel %vm380_vm1, %v379_v16, 0.0 }
  0xfa   : > { %382 = vadd.xlane.f32.xlu0 %v381_v18  ;;  %v547_v19 = vpop.f32.mrf.mxu0 }
 0x183   : > { %v383_v20 = vpop.xlane.xlu0 %382 }
 0x184   : > { %v385_v21 = vmul.f32 0.03125, %v383_v20 }
 0x186   : > { %v386_v22 = vsub.f32 %v379_v16, %v385_v21 }
 0x188   : > { %v387_v23 = vmul.f32 %v386_v22, %v386_v22 }
 0x18a   : > { %v388_v24 = vsel %vm380_vm1, %v387_v23, 0.0 }
 0x18b   : > { %389 = vadd.xlane.f32.xlu0 %v388_v24 }
 0x214   : > { %v390_v25 = vpop.xlane.xlu0 %389 }
 0x215   : > { %v391_v26 = vmul.f32 0.03125, %v390_v25 }
 0x217   : > { %v392_v27 = vadd.f32 1e-12, %v391_v26 }
 0x219   : > { %597 = vrsqrt.f32 %v392_v27 }
 0x226   : > { %v598_v28 = vpop.eup %597 }
 0x227   : > { %v394_v30 = vmul.f32 %v598_v28, %v386_v22 }
 0x229   : > { %v402_v32 = vmul.f32 %v513_v29, %v394_v30 }
 0x22b   : > { %v410_v33 = vadd.f32 %v514_v31, %v402_v32 }
 0x22d   : > { %411 = vst.msk [vmem:[%s255_s12] sm:$0xff] %vm380_vm1, %v410_v33 }
 0x22e   : > { %612 = shalt.err (!%p609_p3)
}
 0x22f   : > { %s613_s26 = scalar_lea.hbm %s424_s16, 128  ;;  %s617_s9 = scalar_lea.hbm %s831_s6, 256 }
 0x230   : > { %p614_p4 = scmp.ne.s32.totalorder %s424_s16, %s613_s26  ;;  %p618_p9 = scmp.lt.s32.totalorder %s424_s16, %s831_s6 }
 0x231   : > { %p619_p10 = scmp.lt.s32.totalorder %s617_s9, %s613_s26 }
 0x232   : > { %p615_p7 = pnand %p614_p4, %p737_p5 }
 0x233   : > { %p620_p11 = por %p619_p10, %p618_p9 }
 0x234   : > { %p616_p8 = pneg %p615_p7 }
 0x236   : > { %p621_p12 = pnand %p620_p11, %p616_p8 }
 0x238   : > { %624 = shalt.err (!%p621_p12)
}
 0x239   : > { %548 = dma.vmem_to_hbm [thread:$0]  (%p737_p5), %s427_s13, 128, %s424_s16, %s413_s17  }
 0x23a PF: > { %p554_p13 = scmp.ge.s32.totalorder %s659_s24, 2  ;;  %s438_s12 = sand.u32 1, %s647_s21  }
 0x23b   : > { %s439_s14 = scalar_lea.sflag [#allocation3], %s438_s12 }
 0x23c   : > { %p551_p0 = pnand %p554_p13, %p741_p6 }
 0x23e   : > { %p552_p1 = pneg %p551_p0 }
 0x240   : > { %642 = dma.done.wait (%p552_p1), %s439_s14, 128  }
 0x241   : > { %644 = vsyncadd (%p552_p1), %s439_s14, 4294967168  ;;  %p16_p2 = scmp.ge.s32.totalorder %s724_s27, 4   ;;  %s834_s21 = smov %s651_s22 }
 0x242   : > { %s835_s22 = smov %s655_s23  ;;  %s836_s23 = smov %s735_s30 }
 0x243   : > { %s837_s24 = smov %s724_s27  ;;  %18 = sbr.rel (!%p16_p2) target bundleno = 3 (0x3), region = 82 }
 0x248   :  { %444 = vsyncpa [#allocation3], 1 }
 0x249   :  { %446 = vsyncpa [#allocation3 + $0x1], 1 }

</bundles_post_ra>
